<compile_context>
chip_gen: v7x
topology: tpu7x:2x2x1
jax: 0.10.0
libtpu: 0.0.40
codegen_flags: <defaults>
</compile_context>

<pallas_src>
import functools

import jax
import jax.numpy as jnp
from jax.experimental import pallas as pl
from jax.experimental.pallas import tpu as pltpu


def _round_up(x: int, m: int) -> int:
    return (x + m - 1) // m * m


def _mlp_fused_kernel(x_ref, w1_ref, b1_ref, w2_ref, b2_ref, w3_ref, b3_ref,
                      o_ref):
    """Fused fc1+relu -> fc2+relu -> fc3 on one batch tile, all in VMEM/vregs."""
    # In-kernel cast: x arrives as f32 straight from HBM (no wrapper pad/cast).
    x = x_ref[...].astype(jnp.bfloat16)
    # fc1 + relu   (bf16 operands, f32 MXU accumulate)
    h = jnp.dot(x, w1_ref[...], preferred_element_type=jnp.float32)
    h = jnp.maximum(h + b1_ref[...], 0.0).astype(jnp.bfloat16)
    # fc2 + relu   (H2 lane-padded 64 -> 128; padded columns stay exactly 0)
    h = jnp.dot(h, w2_ref[...], preferred_element_type=jnp.float32)
    h = jnp.maximum(h + b2_ref[...], 0.0).astype(jnp.bfloat16)
    # fc3 (logits, lane-padded to 128 for unmasked lane-dense stores)
    y = jnp.dot(h, w3_ref[...], preferred_element_type=jnp.float32)
    o_ref[...] = (y + b3_ref[...]).astype(o_ref.dtype)


def prepare_params(params):
    """One-time weight layout prep: bf16 cast + zero-pad to lane-aligned shapes.

    Call once at init / checkpoint-load time and reuse the result; this keeps
    the cast/pad traffic out of every forward call.
    """
    (w1, b1), (w2, b2), (w3, b3) = params
    K, H1 = w1.shape
    H2, NO = w3.shape
    assert w2.shape == (H1, H2)
    H2P = _round_up(H2, 128)   # 64 -> 128  (lane-dense fc2 act / fc3 contraction)
    NOP = _round_up(NO, 128)   # 10 -> 128  (lane-dense output stores)
    bf16, f32 = jnp.bfloat16, jnp.float32
    return {
        "w1": w1.astype(bf16),                                           # (784, 256)
        "b1": b1.astype(f32).reshape(1, H1),                             # (1, 256)
        "w2": jnp.pad(w2.astype(bf16), ((0, 0), (0, H2P - H2))),         # (256, 128)
        "b2": jnp.pad(b2.astype(f32), (0, H2P - H2)).reshape(1, H2P),    # (1, 128)
        "w3": jnp.pad(w3.astype(bf16), ((0, H2P - H2), (0, NOP - NO))),  # (128, 128)
        "b3": jnp.pad(b3.astype(f32), (0, NOP - NO)).reshape(1, NOP),    # (1, 128)
    }


def _pick_batch_tile(B: int) -> int:
    # Big tiles fill v6e/v7x's 256-wide MXU and amortize the ~0.35 us/step
    # overhead; keep >=2 grid steps when the batch allows so the "parallel"
    # batch axis actually splits across v7x's two TensorCores.
    if B >= 1024:
        return 512
    if B >= 512:
        return 256
    if B >= 128:
        return 128
    # Tiny batch: one tile, rounded to 16 rows (bf16 sublane packing).
    return _round_up(B, 16)


def net_forward_pallas(x, prep, num_classes=10):
    """x: (B, 784) f32; prep: output of prepare_params(). Returns (B, 10) f32."""
    B, K = x.shape
    w1, b1 = prep["w1"], prep["b1"]
    w2, b2 = prep["w2"], prep["b2"]
    w3, b3 = prep["w3"], prep["b3"]
    assert K == w1.shape[0]
    H1, H2P = w1.shape[1], w2.shape[1]
    NOP = w3.shape[1]

    TB = _pick_batch_tile(B)
    BP = _round_up(B, TB)
    if BP != B:
        # Batch-dim-only zero pad (cheap; no full activation cast round trip).
        x = jnp.pad(x, ((0, BP - B), (0, 0)))

    grid = (BP // TB,)
    out_dtype = jnp.float32  # f32 logits to match the PyTorch module; flip to
                             # bf16 if downstream tolerates it (halves writeback).

    cost = pl.CostEstimate(
        flops=2 * BP * (K * H1 + H1 * H2P + H2P * NOP),
        transcendentals=0,
        # Each weight/bias is DMA'd once (constant index_map); x read once as
        # f32; padded logits written once.
        bytes_accessed=(BP * K * 4
                        + (w1.size + w2.size + w3.size) * 2
                        + (b1.size + b2.size + b3.size) * 4
                        + BP * NOP * jnp.dtype(out_dtype).itemsize),
    )

    out_padded = pl.pallas_call(
        _mlp_fused_kernel,
        out_shape=jax.ShapeDtypeStruct((BP, NOP), out_dtype),
        grid_spec=pltpu.PrefetchScalarGridSpec(
            num_scalar_prefetch=0,
            grid=grid,
            in_specs=[
                pl.BlockSpec((TB, K), lambda i: (i, 0)),      # x: batch-tiled, f32
                pl.BlockSpec((K, H1), lambda i: (0, 0)),      # w1: VMEM-resident
                pl.BlockSpec((1, H1), lambda i: (0, 0)),      # b1
                pl.BlockSpec((H1, H2P), lambda i: (0, 0)),    # w2 (lane-padded)
                pl.BlockSpec((1, H2P), lambda i: (0, 0)),     # b2
                pl.BlockSpec((H2P, NOP), lambda i: (0, 0)),   # w3 (lane-padded)
                pl.BlockSpec((1, NOP), lambda i: (0, 0)),     # b3 (lane-padded)
            ],
            out_specs=pl.BlockSpec((TB, NOP), lambda i: (i, 0)),
        ),
        compiler_params=pltpu.CompilerParams(
            dimension_semantics=("parallel",),   # split batch tiles across TCs
        ),
        cost_estimate=cost,
    )(x, w1, b1, w2, b2, w3, b3)

    return out_padded[:B, :num_classes]


def init_params(key):
    """Deterministic init mirroring nn.Linear default (uniform +-1/sqrt(fan_in)).

    Weights stored as (in_features, out_features) so y = x @ w + b == x @ W.T + b.
    """
    dims = [(28 * 28, 256), (256, 64), (64, 10)]
    params = []
    for i, (fan_in, fan_out) in enumerate(dims):
        kw, kb = jax.random.split(jax.random.fold_in(key, i))
        bound = 1.0 / jnp.sqrt(float(fan_in))
        w = jax.random.uniform(kw, (fan_in, fan_out), jnp.float32, -bound, bound)
        b = jax.random.uniform(kb, (fan_out,), jnp.float32, -bound, bound)
        params.append((w, b))
    return params


@functools.partial(jax.jit, static_argnames=("num_classes",))
def net_forward(x, prep, num_classes=10):
    return net_forward_pallas(x, prep, num_classes)


if __name__ == "__main__":
    key = jax.random.PRNGKey(0)
    kx, kp = jax.random.split(key)

    B = 8
    x = jax.random.normal(kx, (B, 28 * 28), jnp.float32)  # flattened MNIST images
    params = init_params(kp)
    prep = prepare_params(params)   # one-time cast/pad, reused across calls

    out = net_forward(x, prep)
    jax.block_until_ready(out)
    assert out.shape == (B, 10)

    # Pure-JAX reference of the same bf16-operand / f32-accumulate math.
    def _q(a):  # mimic the kernel's bf16 rounding of matmul operands
        return a.astype(jnp.bfloat16).astype(jnp.float32)

    (w1, b1), (w2, b2), (w3, b3) = params
    ref = jnp.maximum(_q(x) @ _q(w1) + b1, 0.0)
    ref = jnp.maximum(_q(ref) @ _q(w2) + b2, 0.0)
    ref = _q(ref) @ _q(w3) + b3

    assert jnp.allclose(out, ref, atol=2e-2, rtol=2e-2), (
        float(jnp.max(jnp.abs(out - ref))))

    print("KERNEL_OK")
</pallas_src>

<mosaic_0001>
module attributes {stable_mosaic.version = 11 : i64} {
  func.func @_mlp_fused_kernel(%arg0: i32, %arg1: memref<16x784xf32, #tpu.memory_space<vmem>>, %arg2: memref<784x256xbf16, #tpu.memory_space<vmem>>, %arg3: memref<1x256xf32, #tpu.memory_space<vmem>>, %arg4: memref<256x128xbf16, #tpu.memory_space<vmem>>, %arg5: memref<1x128xf32, #tpu.memory_space<vmem>>, %arg6: memref<128x128xbf16, #tpu.memory_space<vmem>>, %arg7: memref<1x128xf32, #tpu.memory_space<vmem>>, %arg8: memref<16x128xf32, #tpu.memory_space<vmem>>) attributes {dimension_semantics = [#tpu.dimension_semantics<parallel>], iteration_bounds = array<i64: 1>, scalar_prefetch = 0 : i64, scratch_operands = 0 : i64, tpu.core_type = #tpu.core_type<tc>, window_params = [{transform_indices = @transform_0, window_bounds = array<i64: 16, 784>}, {pipeline_mode = #tpu.pipeline_mode<synchronous>, transform_indices = @transform_1, window_bounds = array<i64: 784, 256>}, {pipeline_mode = #tpu.pipeline_mode<synchronous>, transform_indices = @transform_2, window_bounds = array<i64: 1, 256>}, {pipeline_mode = #tpu.pipeline_mode<synchronous>, transform_indices = @transform_3, window_bounds = array<i64: 256, 128>}, {pipeline_mode = #tpu.pipeline_mode<synchronous>, transform_indices = @transform_4, window_bounds = array<i64: 1, 128>}, {pipeline_mode = #tpu.pipeline_mode<synchronous>, transform_indices = @transform_5, window_bounds = array<i64: 128, 128>}, {pipeline_mode = #tpu.pipeline_mode<synchronous>, transform_indices = @transform_6, window_bounds = array<i64: 1, 128>}, {transform_indices = @transform_7, window_bounds = array<i64: 16, 128>}]} {
    %c0 = arith.constant 0 : index
    %c0_0 = arith.constant 0 : index
    %0 = vector.load %arg1[%c0, %c0_0] : memref<16x784xf32, #tpu.memory_space<vmem>>, vector<16x784xf32>
    %1 = arith.truncf %0 : vector<16x784xf32> to vector<16x784xbf16>
    %c0_1 = arith.constant 0 : index
    %c0_2 = arith.constant 0 : index
    %2 = vector.load %arg2[%c0_1, %c0_2] : memref<784x256xbf16, #tpu.memory_space<vmem>>, vector<784x256xbf16>
    %cst = arith.constant dense<0.000000e+00> : vector<16x256xf32>
    %3 = tpu.matmul %1, %2, %cst {dimension_numbers = #tpu.dot_dimension_numbers<[1], [0], [0], [1], [0, 0, 1, 1], [], []>} : vector<16x784xbf16>, vector<784x256xbf16>, vector<16x256xf32> -> vector<16x256xf32>
    %c0_3 = arith.constant 0 : index
    %c0_4 = arith.constant 0 : index
    %4 = vector.load %arg3[%c0_3, %c0_4] : memref<1x256xf32, #tpu.memory_space<vmem>>, vector<1x256xf32>
    %5 = vector.broadcast %4 : vector<1x256xf32> to vector<16x256xf32>
    %6 = arith.addf %3, %5 : vector<16x256xf32>
    %cst_5 = arith.constant 0.000000e+00 : f32
    %7 = vector.broadcast %cst_5 : f32 to vector<16x256xf32>
    %8 = arith.maximumf %6, %7 : vector<16x256xf32>
    %9 = arith.truncf %8 : vector<16x256xf32> to vector<16x256xbf16>
    %c0_6 = arith.constant 0 : index
    %c0_7 = arith.constant 0 : index
    %10 = vector.load %arg4[%c0_6, %c0_7] : memref<256x128xbf16, #tpu.memory_space<vmem>>, vector<256x128xbf16>
    %cst_8 = arith.constant dense<0.000000e+00> : vector<16x128xf32>
    %11 = tpu.matmul %9, %10, %cst_8 {dimension_numbers = #tpu.dot_dimension_numbers<[1], [0], [0], [1], [0, 0, 1, 1], [], []>} : vector<16x256xbf16>, vector<256x128xbf16>, vector<16x128xf32> -> vector<16x128xf32>
    %c0_9 = arith.constant 0 : index
    %c0_10 = arith.constant 0 : index
    %12 = vector.load %arg5[%c0_9, %c0_10] : memref<1x128xf32, #tpu.memory_space<vmem>>, vector<1x128xf32>
    %13 = vector.broadcast %12 : vector<1x128xf32> to vector<16x128xf32>
    %14 = arith.addf %11, %13 : vector<16x128xf32>
    %cst_11 = arith.constant 0.000000e+00 : f32
    %15 = vector.broadcast %cst_11 : f32 to vector<16x128xf32>
    %16 = arith.maximumf %14, %15 : vector<16x128xf32>
    %17 = arith.truncf %16 : vector<16x128xf32> to vector<16x128xbf16>
    %c0_12 = arith.constant 0 : index
    %c0_13 = arith.constant 0 : index
    %18 = vector.load %arg6[%c0_12, %c0_13] : memref<128x128xbf16, #tpu.memory_space<vmem>>, vector<128x128xbf16>
    %cst_14 = arith.constant dense<0.000000e+00> : vector<16x128xf32>
    %19 = tpu.matmul %17, %18, %cst_14 {dimension_numbers = #tpu.dot_dimension_numbers<[1], [0], [0], [1], [0, 0, 1, 1], [], []>} : vector<16x128xbf16>, vector<128x128xbf16>, vector<16x128xf32> -> vector<16x128xf32>
    %c0_15 = arith.constant 0 : index
    %c0_16 = arith.constant 0 : index
    %20 = vector.load %arg7[%c0_15, %c0_16] : memref<1x128xf32, #tpu.memory_space<vmem>>, vector<1x128xf32>
    %21 = vector.broadcast %20 : vector<1x128xf32> to vector<16x128xf32>
    %22 = arith.addf %19, %21 : vector<16x128xf32>
    %c0_17 = arith.constant 0 : index
    %c0_18 = arith.constant 0 : index
    %23 = vector.load %arg8[%c0_17, %c0_18] : memref<16x128xf32, #tpu.memory_space<vmem>>, vector<16x128xf32>
    tpu.vector_store %arg8[%c0_17, %c0_18], %22 {strides = array<i32>} : memref<16x128xf32, #tpu.memory_space<vmem>>, vector<16x128xf32>,
    return
  }
  func.func @transform_0(%arg0: i32) -> (i32, i32) {
    %c0_i32 = arith.constant 0 : i32
    %c0_i32_0 = arith.constant 0 : i32
    return %arg0, %c0_i32 : i32, i32
  }
  func.func @transform_1(%arg0: i32) -> (i32, i32) {
    %c0_i32 = arith.constant 0 : i32
    %c0_i32_0 = arith.constant 0 : i32
    %c0_i32_1 = arith.constant 0 : i32
    return %c0_i32, %c0_i32_0 : i32, i32
  }
  func.func @transform_2(%arg0: i32) -> (i32, i32) {
    %c0_i32 = arith.constant 0 : i32
    %c0_i32_0 = arith.constant 0 : i32
    %c0_i32_1 = arith.constant 0 : i32
    return %c0_i32, %c0_i32_0 : i32, i32
  }
  func.func @transform_3(%arg0: i32) -> (i32, i32) {
    %c0_i32 = arith.constant 0 : i32
    %c0_i32_0 = arith.constant 0 : i32
    %c0_i32_1 = arith.constant 0 : i32
    return %c0_i32, %c0_i32_0 : i32, i32
  }
  func.func @transform_4(%arg0: i32) -> (i32, i32) {
    %c0_i32 = arith.constant 0 : i32
    %c0_i32_0 = arith.constant 0 : i32
    %c0_i32_1 = arith.constant 0 : i32
    return %c0_i32, %c0_i32_0 : i32, i32
  }
  func.func @transform_5(%arg0: i32) -> (i32, i32) {
    %c0_i32 = arith.constant 0 : i32
    %c0_i32_0 = arith.constant 0 : i32
    %c0_i32_1 = arith.constant 0 : i32
    return %c0_i32, %c0_i32_0 : i32, i32
  }
  func.func @transform_6(%arg0: i32) -> (i32, i32) {
    %c0_i32 = arith.constant 0 : i32
    %c0_i32_0 = arith.constant 0 : i32
    %c0_i32_1 = arith.constant 0 : i32
    return %c0_i32, %c0_i32_0 : i32, i32
  }
  func.func @transform_7(%arg0: i32) -> (i32, i32) {
    %c0_i32 = arith.constant 0 : i32
    %c0_i32_0 = arith.constant 0 : i32
    return %arg0, %c0_i32 : i32, i32
  }
}

</mosaic_0001>

<bundles_post_ra>
// kernel: net_forward.1
= control target key start
LH: loop header
LB: loop body
LE: loop exit
PB: predicated region body
PF: predicated region fallthrough
CT: control target
= control target key end

     0   :  { %12 = vsyncpa [#allocation3], 0  ;;  %s1755_s0 = inlined_call_operand.vmem [shape: f32[16,784], index: 0, kind: input, shape index: {}]   ;;  %s1756_s1 = inlined_call_operand.hbm [shape: bf16[784,256], index: 1, kind: input, shape index: {}]   ;;  %s1757_s2 = inlined_call_operand.vmem [shape: f32[1,256], index: 2, kind: input, shape index: {}]   ;;  %s1758_s3 = inlined_call_operand.vmem [shape: bf16[256,128], index: 3, kind: input, shape index: {}]   ;;  %s1759_s4 = inlined_call_operand.vmem [shape: f32[1,128], index: 4, kind: input, shape index: {}]   ;;  %s1760_s5 = inlined_call_operand.hbm [shape: bf16[128,128], index: 5, kind: input, shape index: {}]   ;;  %s1761_s6 = inlined_call_operand.vmem [shape: f32[1,128], index: 6, kind: input, shape index: {}]   ;;  %s1762_s7 = inlined_call_operand.vmem [shape: f32[16,128], index: 7, kind: output, shape index: {}]  }
   0x1   :  { %13 = vsyncpa [#allocation5], 0  ;;  %s1577_s24 = smov [#allocation2]   ;;  %s1529_s28 = scalar_lea.hbm %s1756_s1, 12544 }
   0x2   :  { %s21_s25 = sshll.u32 %s1577_s24, 4  ;;  %p1530_p0 = scmp.ne.s32.totalorder %s1756_s1, %s1529_s28  ;;  %s22_s25 = int_to_ptr.vmem [resolvable:$true] %s21_s25 }
   0x3   :  { %p1533_p1 = scmp.lt.u32.totalorder %s1529_s28, %s1756_s1 }
   0x5   :  { %p1535_p2 = pnand %p1533_p1, %p1530_p0 }
   0x7   :  { %1538 = shalt.err (!%p1535_p2)
}
   0x8   :  { %s1539_s10 = scalar_lea.vmem %s22_s25, 12544  ;;  %p1544_p4 = scmp.lt.s32.totalorder %s22_s25, %s22_s25 }
   0x9   :  { %p1540_p3 = scmp.ne.s32.totalorder %s22_s25, %s1539_s10  ;;  %p1545_p5 = scmp.lt.s32.totalorder %s1539_s10, %s1539_s10 }
   0xb   :  { %p1546_p6 = por %p1545_p5, %p1544_p4 }
   0xd   :  { %p1547_p7 = pnand %p1546_p6, %p1540_p3 }
   0xf   :  { %1550 = shalt.err (!%p1547_p7)
}
  0x10   :  { %s1578_s11 = smov 128   ;;  %s1579_s12 = smov 8  }
  0x11   :  { %27 = dma.hbm_to_vmem [thread:$0]  %s1756_s1, 12544, %s22_s25, [#allocation3], %s1578_s11, %s1578_s11, %s1579_s12  }
  0x12   :  { %s1580_s15 = smov [#allocation4]   ;;  %s1551_s19 = scalar_lea.hbm %s1760_s5, 1024 }
  0x13   :  { %s39_s16 = sshll.u32 %s1580_s15, 4  ;;  %p1552_p8 = scmp.ne.s32.totalorder %s1760_s5, %s1551_s19  ;;  %s40_s16 = int_to_ptr.vmem [resolvable:$true] %s39_s16 }
  0x14   :  { %p1555_p9 = scmp.lt.u32.totalorder %s1551_s19, %s1760_s5 }
  0x16   :  { %p1557_p10 = pnand %p1555_p9, %p1552_p8 }
  0x18   :  { %1560 = shalt.err (!%p1557_p10)
}
  0x19   :  { %s1561_s24 = scalar_lea.vmem %s40_s16, 1024  ;;  %p1566_p12 = scmp.lt.s32.totalorder %s40_s16, %s40_s16 }
  0x1a   :  { %p1562_p11 = scmp.ne.s32.totalorder %s40_s16, %s1561_s24  ;;  %p1567_p13 = scmp.lt.s32.totalorder %s1561_s24, %s1561_s24 }
  0x1c   :  { %p1568_p0 = por %p1567_p13, %p1566_p12 }
  0x1e   :  { %p1569_p1 = pnand %p1568_p0, %p1562_p11 }
  0x20   :  { %1572 = shalt.err (!%p1569_p1)
}
  0x21   :  { %s1581_s1 = smov 64   ;;  %s1582_s25 = smov 4  }
  0x22   :  { %45 = dma.hbm_to_vmem [thread:$0]  %s1760_s5, 1024, %s40_s16, [#allocation5], %s1581_s1, %s1581_s1, %s1582_s25  }
  0x23   :  { %1573 = dma.done.wait [#allocation3], 12544  }
  0x24   :  { %1574 = vsyncadd [#allocation3], 4294954752 }
  0x25   :  { %1575 = dma.done.wait [#allocation5], 1024  }
  0x26   :  { %1576 = vsyncadd [#allocation5], 4294966272  ;;  %v1358_v0 = vld [vmem:[#allocation2 + $0x104] ss:$8 sps:$4 sm:$0xff]   ;;  %v1360_v1 = vld [vmem:[#allocation2 + $0x100] ss:$8 sps:$4 sm:$0xff]  }
  0x27   :  { %723 = vmatprep.subr.bf16.mxu0 %v1358_v0  ;;  %v1361_v2 = vld [vmem:[#allocation2 + $0x114] ss:$8 sps:$4 sm:$0xff]   ;;  %v1363_v3 = vld [vmem:[#allocation2 + $0x110] ss:$8 sps:$4 sm:$0xff]   ;;  %v1364_v4 = vld [vmem:[#allocation2 + $0x124] ss:$8 sps:$4 sm:$0xff]  }
  0x28   :  { %724 = vmatpush1.bf16.msra.mxu0 %v1360_v1  ;;  %v1366_v5 = vld [vmem:[#allocation2 + $0x120] ss:$8 sps:$4 sm:$0xff]   ;;  %v1367_v6 = vld [vmem:[#allocation2 + $0x134] ss:$8 sps:$4 sm:$0xff]   ;;  %v1369_v7 = vld [vmem:[#allocation2 + $0x130] ss:$8 sps:$4 sm:$0xff]  }
  0x29   :  { %725 = vmatprep.subr.bf16.mxu0 %v1361_v2  ;;  %v1370_v8 = vld [vmem:[#allocation2 + $0x144] ss:$8 sps:$4 sm:$0xff]   ;;  %v1372_v9 = vld [vmem:[#allocation2 + $0x140] ss:$8 sps:$4 sm:$0xff]   ;;  %v1373_v10 = vld [vmem:[#allocation2 + $0x154] ss:$8 sps:$4 sm:$0xff]  }
  0x2a   :  { %v1375_v11 = vld [vmem:[#allocation2 + $0x150] ss:$8 sps:$4 sm:$0xff]   ;;  %v1376_v12 = vld [vmem:[#allocation2 + $0x164] ss:$8 sps:$4 sm:$0xff]   ;;  %v1378_v16 = vld [vmem:[#allocation2 + $0x160] ss:$8 sps:$4 sm:$0xff]  }
  0x2b   :  { %v58_v13 = vld [vmem:[%s1755_s0 + $0x18] sm:$0xff]  ;;  %v65_v14 = vld [vmem:[%s1755_s0 + $0x50] sm:$0xff]  ;;  %v1412_v18 = vld [vmem:[#allocation2 + $0x4] ss:$8 sps:$4 sm:$0xff]   ;;  %vm676_vm0 = vcmask 130048   ;;  %vm1585_vm1 = vmmov 0  }
  0x2c   :  { %726 = vmatpush1.bf16.msra.mxu0 %v1363_v3  ;;  %v72_v15 = vpack.c.bf16 %v65_v14, %v58_v13  ;;  %v1379_v17 = vld [vmem:[#allocation2 + $0x174] ss:$8 sps:$4 sm:$0xff]   ;;  %v1381_v19 = vld [vmem:[#allocation2 + $0x170] ss:$8 sps:$4 sm:$0xff]   ;;  %v1382_v20 = vld [vmem:[#allocation2 + $0x184] ss:$8 sps:$4 sm:$0xff]   ;;  %680 = vmatprep.subr.bf16.mxu1 %v1412_v18 }
  0x2d   :  { %727 = vmatprep.subr.bf16.mxu0 %v1364_v4  ;;  %v1417_v21 = vld [vmem:[#allocation2] ss:$8 sps:$4 sm:$0xff]   ;;  %v1418_v22 = vld [vmem:[#allocation2 + $0x14] ss:$8 sps:$4 sm:$0xff]   ;;  %v1423_v24 = vld [vmem:[#allocation2 + $0x10] ss:$8 sps:$4 sm:$0xff]  }
  0x2e   :  { %755 = vmatprep.mubr.bf16.mxu0 %v72_v15  ;;  %681 = vmatpush1.bf16.msra.mxu1 %v1417_v21  ;;  %v1384_v23 = vld [vmem:[#allocation2 + $0x180] ss:$8 sps:$4 sm:$0xff]   ;;  %v1424_v25 = vld [vmem:[#allocation2 + $0x24] ss:$8 sps:$4 sm:$0xff]   ;;  %v1385_v26 = vld [vmem:[#allocation2 + $0x194] ss:$8 sps:$4 sm:$0xff]  }
  0x2f   :  { %682 = vmatprep.subr.bf16.mxu1 %v1418_v22  ;;  %v1429_v27 = vld [vmem:[#allocation2 + $0x20] ss:$8 sps:$4 sm:$0xff]   ;;  %v1430_v28 = vld [vmem:[#allocation2 + $0x34] ss:$8 sps:$4 sm:$0xff]   ;;  %v1387_v29 = vld [vmem:[#allocation2 + $0x190] ss:$8 sps:$4 sm:$0xff]  }
  0x30   :  { %728 = vmatpush1.bf16.msra.mxu0 %v1366_v5  ;;  %v1388_v30 = vld [vmem:[#allocation2 + $0x1a4] ss:$8 sps:$4 sm:$0xff]   ;;  %v1435_v31 = vld [vmem:[#allocation2 + $0x30] ss:$8 sps:$4 sm:$0xff]   ;;  %v1390_v33 = vld [vmem:[#allocation2 + $0x1a0] ss:$8 sps:$4 sm:$0xff]  }
  0x31   :  { %729 = vmatprep.subr.bf16.mxu0 %v1367_v6  ;;  %v1436_v32 = vld [vmem:[#allocation2 + $0x44] ss:$8 sps:$4 sm:$0xff]   ;;  %v1391_v34 = vld [vmem:[#allocation2 + $0x1b4] ss:$8 sps:$4 sm:$0xff]   ;;  %v1441_v35 = vld [vmem:[#allocation2 + $0x40] ss:$8 sps:$4 sm:$0xff]  }
  0x32   :  { %683 = vmatpush1.bf16.msra.mxu1 %v1423_v24  ;;  %v1442_v36 = vld [vmem:[#allocation2 + $0x54] ss:$8 sps:$4 sm:$0xff]   ;;  %v1393_v37 = vld [vmem:[#allocation2 + $0x1b0] ss:$8 sps:$4 sm:$0xff]   ;;  %v1394_v38 = vld [vmem:[#allocation2 + $0x1c4] ss:$8 sps:$4 sm:$0xff]  }
  0x33   :  { %684 = vmatprep.subr.bf16.mxu1 %v1424_v25  ;;  %v1447_v39 = vld [vmem:[#allocation2 + $0x50] ss:$8 sps:$4 sm:$0xff]   ;;  %v1448_v40 = vld [vmem:[#allocation2 + $0x64] ss:$8 sps:$4 sm:$0xff]   ;;  %v1396_v41 = vld [vmem:[#allocation2 + $0x1c0] ss:$8 sps:$4 sm:$0xff]  }
  0x34   :  { %730 = vmatpush1.bf16.msra.mxu0 %v1369_v7  ;;  %v1397_v42 = vld [vmem:[#allocation2 + $0x1d4] ss:$8 sps:$4 sm:$0xff]   ;;  %v1453_v43 = vld [vmem:[#allocation2 + $0x60] ss:$8 sps:$4 sm:$0xff]   ;;  %v1399_v45 = vld [vmem:[#allocation2 + $0x1d0] ss:$8 sps:$4 sm:$0xff]  }
  0x35   :  { %731 = vmatprep.subr.bf16.mxu0 %v1370_v8  ;;  %v1454_v44 = vld [vmem:[#allocation2 + $0x74] ss:$8 sps:$4 sm:$0xff]   ;;  %v1400_v46 = vld [vmem:[#allocation2 + $0x1e4] ss:$8 sps:$4 sm:$0xff]   ;;  %v1459_v47 = vld [vmem:[#allocation2 + $0x70] ss:$8 sps:$4 sm:$0xff]  }
  0x36   :  { %685 = vmatpush1.bf16.msra.mxu1 %v1429_v27  ;;  %v1460_v48 = vld [vmem:[#allocation2 + $0x84] ss:$8 sps:$4 sm:$0xff]   ;;  %v1402_v49 = vld [vmem:[#allocation2 + $0x1e0] ss:$8 sps:$4 sm:$0xff]   ;;  %v1403_v50 = vld [vmem:[#allocation2 + $0x1f4] ss:$8 sps:$4 sm:$0xff]  }
  0x37   :  { %686 = vmatprep.subr.bf16.mxu1 %v1430_v28  ;;  %v1465_v51 = vld [vmem:[#allocation2 + $0x80] ss:$8 sps:$4 sm:$0xff]   ;;  %v1466_v52 = vld [vmem:[#allocation2 + $0x94] ss:$8 sps:$4 sm:$0xff]   ;;  %v1405_v53 = vld [vmem:[#allocation2 + $0x1f0] ss:$8 sps:$4 sm:$0xff]  }
  0x38   :  { %732 = vmatpush1.bf16.msra.mxu0 %v1372_v9  ;;  %v57_v54 = vld [vmem:[%s1755_s0 + $0x10] sm:$0xff]  ;;  %v64_v55 = vld [vmem:[%s1755_s0 + $0x48] sm:$0xff]  ;;  %v67_v62 = vld [vmem:[%s1755_s0 + $0x60] sm:$0xff] }
  0x39   :  { %733 = vmatprep.subr.bf16.mxu0 %v1373_v10  ;;  %v1408_v56 = vld [vmem:[#allocation2 + $0x204] ss:$8 sps:$4 sm:$0xff]   ;;  %v1471_v57 = vld [vmem:[#allocation2 + $0x90] ss:$8 sps:$4 sm:$0xff]   ;;  %v1406_v58 = vld [vmem:[#allocation2 + $0x200] ss:$8 sps:$4 sm:$0xff]   ;;  %v71_v59 = vpack.c.bf16 %v64_v55, %v57_v54 }
  0x3a   :  { %687 = vmatpush1.bf16.msra.mxu1 %v1435_v31  ;;  %v1472_v60 = vld [vmem:[#allocation2 + $0xa4] ss:$8 sps:$4 sm:$0xff]   ;;  %v1411_v63 = vld [vmem:[#allocation2 + $0x214] ss:$8 sps:$4 sm:$0xff]   ;;  %v1477_v1 = vld [vmem:[#allocation2 + $0xa0] ss:$8 sps:$4 sm:$0xff]  }
  0x3b   :  { %688 = vmatprep.subr.bf16.mxu1 %v1436_v32  ;;  %v60_v61 = vld [vmem:[%s1755_s0 + $0x28] sm:$0xff]  ;;  %v1478_v2 = vld [vmem:[#allocation2 + $0xb4] ss:$8 sps:$4 sm:$0xff]   ;;  %v1409_v3 = vld [vmem:[#allocation2 + $0x210] ss:$8 sps:$4 sm:$0xff]  }
  0x3c   :  { %734 = vmatpush1.bf16.msra.mxu0 %v1375_v11  ;;  %v74_v0 = vpack.c.bf16 %v67_v62, %v60_v61  ;;  %v1416_v4 = vld [vmem:[#allocation2 + $0x224] ss:$8 sps:$4 sm:$0xff]   ;;  %v1483_v7 = vld [vmem:[#allocation2 + $0xb0] ss:$8 sps:$4 sm:$0xff]   ;;  %v1414_v10 = vld [vmem:[#allocation2 + $0x220] ss:$8 sps:$4 sm:$0xff]  }
  0x3d   :  { %735 = vmatprep.subr.bf16.mxu0 %v1376_v12  ;;  %v56_v5 = vld [vmem:[%s1755_s0 + $0x8] sm:$0xff]  ;;  %v63_v6 = vld [vmem:[%s1755_s0 + $0x40] sm:$0xff]  ;;  %v1422_v11 = vld [vmem:[#allocation2 + $0x234] ss:$8 sps:$4 sm:$0xff]   ;;  %v1583_v61 = vmov 0  }
  0x3e   :  { %689 = vmatpush1.bf16.msra.mxu1 %v1441_v35  ;;  %v70_v8 = vpack.c.bf16 %v63_v6, %v56_v5  ;;  %v1484_v9 = vld [vmem:[#allocation2 + $0xc4] ss:$8 sps:$4 sm:$0xff]   ;;  %v1489_v12 = vld [vmem:[#allocation2 + $0xc0] ss:$8 sps:$4 sm:$0xff]   ;;  %v1490_v13 = vld [vmem:[#allocation2 + $0xd4] ss:$8 sps:$4 sm:$0xff]  }
  0x3f   :  { %690 = vmatprep.subr.bf16.mxu1 %v1442_v36  ;;  %v1420_v14 = vld [vmem:[#allocation2 + $0x230] ss:$8 sps:$4 sm:$0xff]   ;;  %v1428_v15 = vld [vmem:[#allocation2 + $0x244] ss:$8 sps:$4 sm:$0xff]   ;;  %v1434_v18 = vld [vmem:[#allocation2 + $0x254] ss:$8 sps:$4 sm:$0xff]  }
  0x40   :  { %736 = vmatpush1.bf16.msra.mxu0 %v1378_v16  ;;  %712 = vmatprep.mubr.bf16.mxu1 %v70_v8  ;;  %v1426_v16 = vld [vmem:[#allocation2 + $0x240] ss:$8 sps:$4 sm:$0xff]   ;;  %v1502_v21 = vld [vmem:[#allocation2 + $0xf4] ss:$8 sps:$4 sm:$0xff]   ;;  %v1432_v22 = vld [vmem:[#allocation2 + $0x250] ss:$8 sps:$4 sm:$0xff]  }
  0x41   :  { %737 = vmatprep.subr.bf16.mxu0 %v1379_v17  ;;  %v1495_v17 = vld [vmem:[#allocation2 + $0xd0] ss:$8 sps:$4 sm:$0xff]   ;;  %v55_v25 = vld [vmem:[%s1755_s0] sm:$0xff]  ;;  %v1507_v32 = vld [vmem:[%s1758_s3 + $0x48] sm:$0xff]   ;;  %v1584_v8 = vmov 0.0  }
  0x42   :  { %691 = vmatpush1.bf16.msra.mxu1 %v1447_v39  ;;  %v1504_v24 = vld [vmem:[#allocation2 + $0xf0] ss:$8 sps:$4 sm:$0xff]   ;;  %v1505_v27 = vld [vmem:[%s1758_s3 + $0x40] sm:$0xff]   ;;  %v1508_v35 = vld [vmem:[%s1758_s3 + $0x8] sm:$0xff]  }
  0x43   :  { %692 = vmatprep.subr.bf16.mxu1 %v1448_v40  ;;  %v1438_v28 = vld [vmem:[#allocation2 + $0x260] ss:$8 sps:$4 sm:$0xff]   ;;  %v1509_v36 = vld [vmem:[%s1758_s3 + $0x50] sm:$0xff]   ;;  %v1511_v40 = vld [vmem:[%s1758_s3 + $0x58] sm:$0xff]  }
  0x44   :  { %738 = vmatpush1.bf16.msra.mxu0 %v1381_v19  ;;  %v1496_v19 = vld [vmem:[#allocation2 + $0xe4] ss:$8 sps:$4 sm:$0xff]   ;;  %v1510_v39 = vld [vmem:[%s1758_s3 + $0x10] sm:$0xff]   ;;  %v1519_v6 = vld [vmem:[%s1758_s3 + $0x78] sm:$0xff]  }
  0x45   :  { %739 = vmatprep.subr.bf16.mxu0 %v1382_v20  ;;  %v1501_v20 = vld [vmem:[#allocation2 + $0xe0] ss:$8 sps:$4 sm:$0xff]   ;;  %v1494_v54 = vld [vmem:[#allocation2 + $0x2f4] ss:$8 sps:$4 sm:$0xff]   ;;  %v1492_v55 = vld [vmem:[#allocation2 + $0x2f0] ss:$8 sps:$4 sm:$0xff]  }
  0x46   :  { %693 = vmatpush1.bf16.msra.mxu1 %v1453_v43  ;;  %v1506_v31 = vld [vmem:[%s1758_s3] sm:$0xff]   ;;  %v1512_v43 = vld [vmem:[%s1758_s3 + $0x18] sm:$0xff]   ;;  %v61_v62 = vld [vmem:[%s1755_s0 + $0x30] sm:$0xff] }
  0x47   :  { %694 = vmatprep.subr.bf16.mxu1 %v1454_v44  ;;  %v1513_v44 = vld [vmem:[%s1758_s3 + $0x60] sm:$0xff]   ;;  %v1518_v5 = vld [vmem:[%s1758_s3 + $0x30] sm:$0xff]  }
  0x48   :  { %740 = vmatpush1.bf16.msra.mxu0 %v1384_v23  ;;  %v1440_v23 = vld [vmem:[#allocation2 + $0x264] ss:$8 sps:$4 sm:$0xff]  }
  0x49   :  { %741 = vmatprep.subr.bf16.mxu0 %v1385_v26  ;;  %v62_v26 = vld [vmem:[%s1755_s0 + $0x38] sm:$0xff] }
  0x4a   :  { %695 = vmatpush1.bf16.msra.mxu1 %v1459_v47  ;;  %v1468_v47 = vld [vmem:[#allocation2 + $0x2b0] ss:$8 sps:$4 sm:$0xff]  }
  0x4b   :  { %696 = vmatprep.subr.bf16.mxu1 %v1460_v48  ;;  %v1476_v48 = vld [vmem:[#allocation2 + $0x2c4] ss:$8 sps:$4 sm:$0xff]  }
  0x4c   :  { %742 = vmatpush1.bf16.msra.mxu0 %v1387_v29  ;;  %v1446_v29 = vld [vmem:[#allocation2 + $0x274] ss:$8 sps:$4 sm:$0xff]  }
  0x4d   :  { %743 = vmatprep.subr.bf16.mxu0 %v1388_v30  ;;  %v69_v30 = vpack.c.bf16 %v62_v26, %v55_v25 }
  0x4e   :  { %697 = vmatpush1.bf16.msra.mxu1 %v1465_v51  ;;  %v1480_v51 = vld [vmem:[#allocation2 + $0x2d0] ss:$8 sps:$4 sm:$0xff]  }
  0x4f   :  { %698 = vmatprep.subr.bf16.mxu1 %v1466_v52  ;;  %v1488_v52 = vld [vmem:[#allocation2 + $0x2e4] ss:$8 sps:$4 sm:$0xff]  }
  0x50   :  { %744 = vmatpush1.bf16.msra.mxu0 %v1390_v33  ;;  %v1444_v33 = vld [vmem:[#allocation2 + $0x270] ss:$8 sps:$4 sm:$0xff]  }
  0x51   :  { %745 = vmatprep.subr.bf16.mxu0 %v1391_v34  ;;  %v1452_v34 = vld [vmem:[#allocation2 + $0x284] ss:$8 sps:$4 sm:$0xff]  }
  0x52   :  { %699 = vmatpush1.bf16.msra.mxu1 %v1471_v57  ;;  %v66_v57 = vld [vmem:[%s1755_s0 + $0x58] sm:$0xff] }
  0x53   :  { %700 = vmatprep.subr.bf16.mxu1 %v1472_v60  ;;  %v1498_v60 = vld [vmem:[#allocation2 + $0x300] ss:$8 sps:$4 sm:$0xff]  }
  0x54   :  { %746 = vmatpush1.bf16.msra.mxu0 %v1393_v37  ;;  %v1450_v37 = vld [vmem:[#allocation2 + $0x280] ss:$8 sps:$4 sm:$0xff]  }
  0x55   :  { %747 = vmatprep.subr.bf16.mxu0 %v1394_v38  ;;  %v1458_v38 = vld [vmem:[#allocation2 + $0x294] ss:$8 sps:$4 sm:$0xff]  }
  0x56   :  { %701 = vmatpush1.bf16.msra.mxu1 %v1477_v1  ;;  %v1514_v1 = vld [vmem:[%s1758_s3 + $0x20] sm:$0xff]  }
  0x57   :  { %702 = vmatprep.subr.bf16.mxu1 %v1478_v2  ;;  %v1515_v2 = vld [vmem:[%s1758_s3 + $0x68] sm:$0xff]  }
  0x58   :  { %748 = vmatpush1.bf16.msra.mxu0 %v1396_v41  ;;  %v1456_v41 = vld [vmem:[#allocation2 + $0x290] ss:$8 sps:$4 sm:$0xff]  }
  0x59   :  { %749 = vmatprep.subr.bf16.mxu0 %v1397_v42  ;;  %v1464_v42 = vld [vmem:[#allocation2 + $0x2a4] ss:$8 sps:$4 sm:$0xff]  }
  0x5a   :  { %703 = vmatpush1.bf16.msra.mxu1 %v1483_v7  ;;  %v1520_v7 = vld [vmem:[%s1758_s3 + $0x38] sm:$0xff]  }
  0x5b   :  { %704 = vmatprep.subr.bf16.mxu1 %v1484_v9 }
  0x5c   :  { %750 = vmatpush1.bf16.msra.mxu0 %v1399_v45  ;;  %v1462_v45 = vld [vmem:[#allocation2 + $0x2a0] ss:$8 sps:$4 sm:$0xff]  }
  0x5d   :  { %751 = vmatprep.subr.bf16.mxu0 %v1400_v46  ;;  %v1470_v46 = vld [vmem:[#allocation2 + $0x2b4] ss:$8 sps:$4 sm:$0xff]  }
  0x5e   :  { %705 = vmatpush1.bf16.msra.mxu1 %v1489_v12 }
  0x5f   :  { %706 = vmatprep.subr.bf16.mxu1 %v1490_v13  ;;  %v176_v13 = vlaneseq }
  0x60   :  { %752 = vmatpush1.bf16.msra.mxu0 %v1402_v49  ;;  %v1474_v49 = vld [vmem:[#allocation2 + $0x2c0] ss:$8 sps:$4 sm:$0xff]  }
  0x61   :  { %753 = vmatprep.subr.bf16.mxu0 %v1403_v50  ;;  %v1482_v50 = vld [vmem:[#allocation2 + $0x2d4] ss:$8 sps:$4 sm:$0xff]  }
  0x62   :  { %707 = vmatpush1.bf16.msra.mxu1 %v1495_v17 }
  0x63   :  { %708 = vmatprep.subr.bf16.mxu1 %v1496_v19 }
  0x64   :  { %754 = vmatpush1.bf16.msra.mxu0 %v1405_v53  ;;  %v1486_v53 = vld [vmem:[#allocation2 + $0x2e0] ss:$8 sps:$4 sm:$0xff]  }
  0x65   :  { %766 = vmatprep.subr.bf16.mxu0 %v1408_v56  ;;  %v59_v56 = vld [vmem:[%s1755_s0 + $0x20] sm:$0xff] }
  0x66   :  { %709 = vmatpush1.bf16.msra.mxu1 %v1501_v20 }
  0x67   :  { %756 = vmatmul.mubr.bf16.vlgmr.msra.gmra.mrb[0].mxu0 %v71_v59  ;;  %710 = vmatprep.subr.bf16.mxu1 %v1502_v21  ;;  %v73_v59 = vpack.c.bf16 %v66_v57, %v59_v56 }
  0x68   :  { %767 = vmatpush1.bf16.msra.mxu0 %v1406_v58  ;;  %798 = vmatprep.mubr.bf16.mxu0 %v74_v0  ;;  %v1500_v58 = vld [vmem:[#allocation2 + $0x304] ss:$8 sps:$4 sm:$0xff]  }
  0x69   :  { %768 = vmatprep.subr.bf16.mxu0 %v1411_v63  ;;  %v68_v63 = vld [vmem:[%s1755_s0 + $0x68] sm:$0xff] }
  0x6a   :  { %711 = vmatpush1.bf16.msra.mxu1 %v1504_v24  ;;  %v75_v0 = vpack.c.bf16 %v68_v63, %v61_v62 }
  0x6b   :  { %1282 = vmatprep.subr.bf16.mxu1 %v1505_v27 }
  0x6c   :  { %769 = vmatpush1.bf16.msra.mxu0 %v1409_v3  ;;  %v1516_v3 = vld [vmem:[%s1758_s3 + $0x28] sm:$0xff]  }
  0x6d   :  { %770 = vmatprep.subr.bf16.mxu0 %v1416_v4  ;;  %713 = vmatmul.mubr.bf16.vlgmr.msra.gmra.mrb[0].mxu1 %v69_v30  ;;  %v1517_v4 = vld [vmem:[%s1758_s3 + $0x70] sm:$0xff]  }
  0x6e   :  { %1283 = vmatpush3.bf16.msra.mxu1 %v1506_v31 }
  0x6f   :  { %1284 = vmatprep.subr.bf16.mxu1 %v1507_v32 }
  0x70   :  { %771 = vmatpush1.bf16.msra.mxu0 %v1414_v10 }
  0x71   :  { %772 = vmatprep.subr.bf16.mxu0 %v1422_v11 }
  0x72   :  { %1285 = vmatpush3.bf16.msra.mxu1 %v1508_v35 }
  0x73   :  { %1286 = vmatprep.subr.bf16.mxu1 %v1509_v36 }
  0x74   :  { %773 = vmatpush1.bf16.msra.mxu0 %v1420_v14  ;;  %v177_v14 = vshrl.u32 %v176_v13, 7 }
  0x75   :  { %774 = vmatprep.subr.bf16.mxu0 %v1428_v15 }
  0x76   :  { %1287 = vmatpush3.bf16.msra.mxu1 %v1510_v39  ;;  %v178_v15 = vsub.s32 0, %v177_v14  ;;  %v182_v17 = vsub.s32 1, %v177_v14  ;;  %v1522_v39 = vld [vmem:[#allocation4 + $0x8] sm:$0xff]  }
  0x77   :  { %1288 = vmatprep.subr.bf16.mxu1 %v1511_v40  ;;  %v1523_v40 = vld [vmem:[#allocation4 + $0x10] sm:$0xff]  }
  0x78   :  { %775 = vmatpush1.bf16.msra.mxu0 %v1426_v16  ;;  %v174_v16 = vld [vmem:[%s1757_s2] sm:$0x3] }
  0x79   :  { %776 = vmatprep.subr.bf16.mxu0 %v1434_v18  ;;  %v179_v18 = vrot.slane %v174_v16, %v178_v15  ;;  %v183_v19 = vrot.slane %v174_v16, %v182_v17 }
  0x7a   :  { %1289 = vmatpush3.bf16.msra.mxu1 %v1512_v43  ;;  %v1526_v43 = vld [vmem:[#allocation4 + $0x28] sm:$0xff]  }
  0x7b   :  { %1290 = vmatprep.subr.bf16.mxu1 %v1513_v44  ;;  %v1527_v44 = vld [vmem:[#allocation4 + $0x30] sm:$0xff]  }
  0x7c   :  { %777 = vmatpush1.bf16.msra.mxu0 %v1432_v22 }
  0x7d   :  { %778 = vmatprep.subr.bf16.mxu0 %v1440_v23 }
  0x7e   :  { %1291 = vmatpush3.bf16.msra.mxu1 %v1514_v1 }
  0x7f   :  { %1292 = vmatprep.subr.bf16.mxu1 %v1515_v2 }
  0x80   :  { %779 = vmatpush1.bf16.msra.mxu0 %v1438_v28 }
  0x81   :  { %780 = vmatprep.subr.bf16.mxu0 %v1446_v29 }
  0x82   :  { %1293 = vmatpush3.bf16.msra.mxu1 %v1516_v3 }
  0x83   :  { %1294 = vmatprep.subr.bf16.mxu1 %v1517_v4 }
  0x84   :  { %781 = vmatpush1.bf16.msra.mxu0 %v1444_v33 }
  0x85   :  { %782 = vmatprep.subr.bf16.mxu0 %v1452_v34 }
  0x86   :  { %1295 = vmatpush3.bf16.msra.mxu1 %v1518_v5 }
  0x87   :  { %1296 = vmatprep.subr.bf16.mxu1 %v1519_v6 }
  0x88   :  { %783 = vmatpush1.bf16.msra.mxu0 %v1450_v37 }
  0x89   :  { %784 = vmatprep.subr.bf16.mxu0 %v1458_v38  ;;  %v1521_v38 = vld [vmem:[#allocation4] sm:$0xff]  }
  0x8a   :  { %1297 = vmatpush3.bf16.msra.mxu1 %v1520_v7 }
  0x8b   :  { %1313 = vmatprep.subr.bf16.mxu1 %v1584_v8 }
  0x8c   :  { %785 = vmatpush1.bf16.msra.mxu0 %v1456_v41  ;;  %v1524_v41 = vld [vmem:[#allocation4 + $0x18] sm:$0xff]  }
  0x8d   :  { %786 = vmatprep.subr.bf16.mxu0 %v1464_v42  ;;  %v1525_v42 = vld [vmem:[#allocation4 + $0x20] sm:$0xff]  }
  0x90   :  { %787 = vmatpush1.bf16.msra.mxu0 %v1462_v45  ;;  %v1528_v45 = vld [vmem:[#allocation4 + $0x38] sm:$0xff]  }
  0x91   :  { %788 = vmatprep.subr.bf16.mxu0 %v1470_v46 }
  0x94   :  { %789 = vmatpush1.bf16.msra.mxu0 %v1468_v47  ;;  %v1256_v47 = vld [vmem:[%s1759_s4] ss:$0 sm:$0xff] }
  0x95   :  { %790 = vmatprep.subr.bf16.mxu0 %v1476_v48 }
  0x98   :  { %791 = vmatpush1.bf16.msra.mxu0 %v1474_v49 }
  0x99   :  { %792 = vmatprep.subr.bf16.mxu0 %v1482_v50 }
  0x9c   :  { %793 = vmatpush1.bf16.msra.mxu0 %v1480_v51 }
  0x9d   :  { %794 = vmatprep.subr.bf16.mxu0 %v1488_v52 }
  0xa0   :  { %795 = vmatpush1.bf16.msra.mxu0 %v1486_v53 }
  0xa1   :  { %796 = vmatprep.subr.bf16.mxu0 %v1494_v54 }
  0xa4   :  { %797 = vmatpush1.bf16.msra.mxu0 %v1492_v55 }
  0xa5   :  { %809 = vmatprep.subr.bf16.mxu0 %v1500_v58  ;;  %v1273_v58 = vld [vmem:[%s1761_s6] ss:$0 sm:$0xff] }
  0xa7   :  { %799 = vmatmul.mubr.bf16.vlgmr.msra.gmra.mrb[0].mxu0 %v73_v59 }
  0xa8   :  { %810 = vmatpush1.bf16.msra.mxu0 %v1498_v60  ;;  %841 = vmatprep.mubr.bf16.mxu0 %v1583_v61 }
  0xb3   :  { %1255 = vmatmul.mubr.msk.bf16.vlgmr.msra.gmra.mrb[0].mxu0 %vm676_vm0, %v75_v0 }
 0x140   :  { %v714_v9 = vpop.f32.mrb[0].mxu1 }
 0x141   :  { %v716_v10 = vpop.f32.mrb[1].mxu1  ;;  %v715_v20 = vadd.f32 %v714_v9, %v179_v18 }
 0x142   :  { %v718_v11 = vpop.f32.mrb[2].mxu1  ;;  %v717_v21 = vadd.f32 %v716_v10, %v183_v19 }
 0x143   :  { %v720_v12 = vpop.f32.mrb[3].mxu1  ;;  %v719_v23 = vadd.f32 %v718_v11, %v179_v18 }
 0x144   :  { %v721_v26 = vadd.f32 %v720_v12, %v183_v19 }
 0x186   :  { %v843_v22 = vpop.f32.mrb[0].mxu0 }
 0x187   :  { %v1334_v24 = vadd.f32 %v843_v22, %v715_v20  ;;  %v845_v25 = vpop.f32.mrb[1].mxu0 }
 0x188   :  { %v1336_v27 = vadd.f32 %v845_v25, %v717_v21  ;;  %v847_v28 = vpop.f32.mrb[2].mxu0 }
 0x189   :  { %v1338_v29 = vadd.f32 %v847_v28, %v719_v23  ;;  %v849_v30 = vpop.f32.mrb[3].mxu0  ;;  %v852_v32 = vmax.f32 %v1334_v24, 0.0 }
 0x18a   :  { %v1340_v31 = vadd.f32 %v849_v30, %v721_v26  ;;  %v853_v34 = vmax.f32 %v1336_v27, 0.0 }
 0x18b   :  { %v854_v33 = vmax.f32 %v1338_v29, 0.0 }
 0x18c   :  { %v855_v35 = vmax.f32 %v1340_v31, 0.0 }
 0x18d   :  { %v856_v36 = vpack.c.bf16 %v854_v33, %v852_v32 }
 0x18e   :  { %v857_v37 = vpack.c.bf16 %v855_v35, %v853_v34 }
 0x190   :  { %1025 = vmatprep.mubr.bf16.mxu1 %v857_v37 }
 0x191   :  { %1026 = vmatmul.mubr.bf16.vlgmr.msra.gmra.mrb[4].mxu1 %v856_v36 }
 0x192   :  { %1314 = vmatpush3.bf16.msra.mxu1 %v1521_v38  ;;  %1329 = vmatprep.mubr.msk.bf16.mxu1 %vm1585_vm1, %v1584_v8 }
 0x193   :  { %1315 = vmatprep.subr.bf16.mxu1 %v1584_v8 }
 0x196   :  { %1316 = vmatpush3.bf16.msra.mxu1 %v1522_v39 }
 0x197   :  { %1317 = vmatprep.subr.bf16.mxu1 %v1584_v8 }
 0x19a   :  { %1318 = vmatpush3.bf16.msra.mxu1 %v1523_v40 }
 0x19b   :  { %1319 = vmatprep.subr.bf16.mxu1 %v1584_v8 }
 0x19e   :  { %1320 = vmatpush3.bf16.msra.mxu1 %v1524_v41 }
 0x19f   :  { %1321 = vmatprep.subr.bf16.mxu1 %v1584_v8 }
 0x1a2   :  { %1322 = vmatpush3.bf16.msra.mxu1 %v1525_v42 }
 0x1a3   :  { %1323 = vmatprep.subr.bf16.mxu1 %v1584_v8 }
 0x1a6   :  { %1324 = vmatpush3.bf16.msra.mxu1 %v1526_v43 }
 0x1a7   :  { %1325 = vmatprep.subr.bf16.mxu1 %v1584_v8 }
 0x1aa   :  { %1326 = vmatpush3.bf16.msra.mxu1 %v1527_v44 }
 0x1ab   :  { %1327 = vmatprep.subr.bf16.mxu1 %v1584_v8 }
 0x1ae   :  { %1328 = vmatpush3.bf16.msra.mxu1 %v1528_v45 }
 0x264   :  { %v1298_v46 = vpop.f32.mrb[4].mxu1 }
 0x265   :  { %v1299_v48 = vpop.f32.mrb[5].mxu1 }
 0x266   :  { %v1300_v49 = vadd.f32 %v1299_v48, %v1298_v46  ;;  %v1301_v50 = vpop.f32.mrb[6].mxu1 }
 0x267   :  { %v1302_v51 = vpop.f32.mrb[7].mxu1 }
 0x268   :  { %v1028_v52 = vadd.f32 %v1300_v49, %v1256_v47  ;;  %v1303_v53 = vadd.f32 %v1302_v51, %v1301_v50 }
 0x26a   :  { %v1031_v54 = vadd.f32 %v1303_v53, %v1256_v47  ;;  %v1034_v55 = vmax.f32 %v1028_v52, 0.0 }
 0x26c   :  { %v1035_v56 = vmax.f32 %v1031_v54, 0.0 }
 0x26e   :  { %v1036_v57 = vpack.c.bf16 %v1035_v56, %v1034_v55 }
 0x270   :  { %1330 = vmatmul.mubr.bf16.vlgmr.msra.gmra.mrb[8].mxu1 %v1036_v57 }
 0x343   :  { %v1142_v59 = vpop.f32.mrb[8].mxu1 }
 0x344   :  { %v1143_v60 = vadd.f32 %v1273_v58, %v1142_v59  ;;  %v1331_v61 = vpop.f32.mrb[9].mxu1 }
 0x345   :  { %v1145_v62 = vpop.f32.mrb[10].mxu1 }
 0x346   :  { %1149 = vst [vmem:[%s1762_s7] sm:$0xff] %v1143_v60  ;;  %v1146_v63 = vadd.f32 %v1273_v58, %v1145_v62  ;;  %v1332_v0 = vpop.f32.mrb[11].mxu1 }
 0x348   :  { %1150 = vst [vmem:[%s1762_s7 + $0x8] sm:$0xff] %v1146_v63 }
 0x349   :  { %1155 = vsyncpa [#allocation3], 1 }
 0x34a   :  { %1156 = vsyncpa [#allocation5], 1 }

</bundles_post_ra>
